<compile_context>
chip_gen: v7x
topology: tpu7x:2x2x1
jax: 0.10.0
libtpu: 0.0.40
codegen_flags: <defaults>
</compile_context>

<pallas_src>
import functools

import jax
import jax.numpy as jnp
import numpy as np
from jax.experimental import pallas as pl
from jax.experimental.pallas import tpu as pltpu


def _cnn_text_kernel(x_ref, wc_ref, bc_ref, mask_ref, wfc1_ref, bfc1_ref,
                     wfc2_ref, bfc2_ref, out_ref, *, n_pos):
    TB, S_pad, E = x_ref.shape
    K_max, _, F_pad = wc_ref.shape
    P = n_pos                                   # conv positions computed per row

    # Load the batch tile once; cast matmul operands to bf16 (f32 accumulate).
    xb = x_ref[...].astype(jnp.bfloat16)        # (TB, S_pad, E)

    # Conv = K_max shifted matmuls on the flattened (TB*P, E) slab, all three
    # packed filter banks at once.
    acc = jnp.zeros((TB * P, F_pad), jnp.float32)
    for dk in range(K_max):                     # static unroll over taps
        xs = xb[:, dk:dk + P, :].reshape(TB * P, E)
        acc = acc + jnp.dot(xs, wc_ref[dk], preferred_element_type=jnp.float32)
    acc = acc.reshape(TB, P, F_pad) + bc_ref[...]          # + packed conv bias

    # ReLU, zero out invalid positions / padded filter columns, then max-pool
    # over positions (adaptive_max_pool2d -> (1,1) per filter).
    act = jnp.maximum(acc, 0.0) * mask_ref[...][None, :, :]
    pooled = jnp.max(act, axis=1)                          # (TB, F_pad)
    pooled = jnp.maximum(pooled, 0.0)   # F.relu on concat (identity, kept for fidelity)

    # fully_connected: Dropout(id) -> Linear -> ReLU -> Dropout(id) -> Linear,
    # batched over the whole tile.
    h = bfc1_ref[...] + jnp.dot(pooled.astype(jnp.bfloat16), wfc1_ref[...],
                                preferred_element_type=jnp.float32)
    h = jnp.maximum(h, 0.0)
    out = bfc2_ref[...] + jnp.dot(h.astype(jnp.bfloat16), wfc2_ref[...],
                                  preferred_element_type=jnp.float32)
    out_ref[...] = out.astype(out_ref.dtype)               # lane-dense (TB, O_pad)


def _round_up(v, m):
    return (v + m - 1) // m * m


def cnn_text_encoder_forward(x, lengths, params, kernels, filters):
    """x: (B, S, E) float32.  lengths: unused (matches the PyTorch forward)."""
    del lengths
    B, S, E = x.shape
    K_max = int(max(kernels))
    F_total = int(sum(filters))
    F_pad = _round_up(F_total, 128)

    wfc1, bfc1 = params["fc1"]                 # (F_total, H), (1, H)
    wfc2, bfc2 = params["fc2"]                 # (H, O),       (1, O)
    outputs = wfc2.shape[1]
    O_pad = _round_up(outputs, 128)

    # Sequence padding: P conv positions per row, x padded so every tap slice
    # [dk : dk+P] is in range.
    P = _round_up(S, 8)
    S_pad = _round_up(P + K_max - 1, 8)

    # Batch tile: fold batch into the MXU M dimension; keep the double-buffered
    # x slab + intermediates well under the scoped VMEM budget (safe for v7x).
    TB = min(_round_up(B, 8), 128)
    while TB > 8 and (2 * TB * S_pad * E * 4 + 3 * TB * P * F_pad * 4) > 24 * (1 << 20):
        TB //= 2
    B_pad = _round_up(B, TB)

    # Pack the three conv filter banks along F (one (E, F_pad) slab per tap).
    w_parts, b_parts = [], []
    for i, k in enumerate(kernels):
        w, b = params[f"conv{i + 1}"]          # (k, E, f), (1, f)
        w_parts.append(jnp.pad(w, ((0, K_max - k), (0, 0), (0, 0))))
        b_parts.append(b)
    w_conv = jnp.pad(jnp.concatenate(w_parts, axis=2),
                     ((0, 0), (0, 0), (0, F_pad - F_total))).astype(jnp.bfloat16)
    b_conv = jnp.pad(jnp.concatenate(b_parts, axis=1),
                     ((0, 0), (0, F_pad - F_total))).astype(jnp.float32)

    # Valid-position mask per packed filter column (padded columns -> 0).
    limits = np.zeros((F_pad,), np.int32)
    col = 0
    for k, f in zip(kernels, filters):
        limits[col:col + f] = S - k + 1
        col += f
    mask = jnp.asarray((np.arange(P)[:, None] < limits[None, :]).astype(np.float32))

    wfc1_p = jnp.pad(wfc1, ((0, F_pad - F_total), (0, 0))).astype(jnp.bfloat16)
    bfc1_p = bfc1.astype(jnp.float32)
    wfc2_p = jnp.pad(wfc2, ((0, 0), (0, O_pad - outputs))).astype(jnp.bfloat16)
    bfc2_p = jnp.pad(bfc2, ((0, 0), (0, O_pad - outputs))).astype(jnp.float32)

    x_pad = jnp.pad(x.astype(jnp.float32),
                    ((0, B_pad - B), (0, S_pad - S), (0, 0)))

    def full(a):
        return pl.BlockSpec(a.shape, lambda i: (0,) * a.ndim)

    out = pl.pallas_call(
        functools.partial(_cnn_text_kernel, n_pos=P),
        out_shape=jax.ShapeDtypeStruct((B_pad, O_pad), jnp.float32),
        grid=(B_pad // TB,),
        in_specs=[
            pl.BlockSpec((TB, S_pad, E), lambda i: (i, 0, 0)),   # batch tile of x
            full(w_conv), full(b_conv), full(mask),
            full(wfc1_p), full(bfc1_p), full(wfc2_p), full(bfc2_p),
        ],
        out_specs=pl.BlockSpec((TB, O_pad), lambda i: (i, 0)),
        compiler_params=pltpu.CompilerParams(
            # Batch-tile axis shards across TensorCores on multi-TC chips.
            dimension_semantics=("parallel",),
        ),
    )(x_pad, w_conv, b_conv, mask, wfc1_p, bfc1_p, wfc2_p, bfc2_p)

    return out[:B, :outputs]


def _reference(x, params):
    """Pure-JAX f32 reference mirroring the PyTorch forward (eval mode, y=None)."""
    hi = jax.lax.Precision.HIGHEST

    def conv_block(w, b):                      # w: (K, E, F), b: (1, F)
        K = w.shape[0]
        T = x.shape[1] - K + 1
        acc = jnp.zeros((x.shape[0], T, w.shape[2]), jnp.float32) + b[None]
        for dk in range(K):
            acc = acc + jnp.einsum("bte,ef->btf", x[:, dk:dk + T, :], w[dk],
                                   precision=hi)
        acc = jax.nn.relu(acc)
        return jnp.max(acc, axis=1)            # (B, F)

    f = jnp.concatenate([conv_block(*params["conv1"]),
                         conv_block(*params["conv2"]),
                         conv_block(*params["conv3"])], axis=1)
    f = jax.nn.relu(f)
    wfc1, bfc1 = params["fc1"]
    wfc2, bfc2 = params["fc2"]
    h = jax.nn.relu(jnp.dot(f, wfc1, precision=hi) + bfc1)
    return jnp.dot(h, wfc2, precision=hi) + bfc2


def make_params(key, kernels, filters, embed_dim, hidden_dim, outputs):
    """Deterministic synthetic parameters with PyTorch-equivalent shapes."""
    keys = jax.random.split(key, 10)
    params = {}
    for i, (k, f) in enumerate(zip(kernels, filters)):
        # PyTorch conv weight (f, 1, k, E) -> stored as (k, E, f)
        w = jax.random.normal(keys[2 * i], (k, embed_dim, f), jnp.float32) * 0.1
        b = jax.random.normal(keys[2 * i + 1], (1, f), jnp.float32) * 0.1
        params[f"conv{i + 1}"] = (w, b)
    f_total = int(np.sum(filters))
    # PyTorch Linear weight (hidden, f_total) -> stored as (f_total, hidden)
    params["fc1"] = (
        jax.random.normal(keys[6], (f_total, hidden_dim), jnp.float32) * 0.1,
        jax.random.normal(keys[7], (1, hidden_dim), jnp.float32) * 0.1,
    )
    params["fc2"] = (
        jax.random.normal(keys[8], (hidden_dim, outputs), jnp.float32) * 0.1,
        jax.random.normal(keys[9], (1, outputs), jnp.float32) * 0.1,
    )
    return params


if __name__ == "__main__":
    B, S, E = 2, 16, 32
    kernels = (3, 4, 5)
    filters = (8, 8, 8)
    hidden_dim = 32
    outputs = 2

    key = jax.random.PRNGKey(0)
    k_x, k_p = jax.random.split(key)
    x = jax.random.normal(k_x, (B, S, E), jnp.float32)
    lengths = jnp.full((B,), S, jnp.int32)        # unused, mirrors the torch API
    params = make_params(k_p, kernels, filters, E, hidden_dim, outputs)

    out = cnn_text_encoder_forward(x, lengths, params, kernels, filters)
    out = jax.block_until_ready(out)

    ref = jax.block_until_ready(_reference(x, params))
    # bf16 matmul operands with f32 accumulation -> mixed-precision tolerance.
    np.testing.assert_allclose(np.asarray(out), np.asarray(ref), rtol=2e-2, atol=2e-2)

    print("KERNEL_OK")
</pallas_src>

<mosaic_0001>
module attributes {stable_mosaic.version = 11 : i64} {
  func.func @_cnn_text_kernel(%arg0: i32, %arg1: memref<8x24x32xf32, #tpu.memory_space<vmem>>, %arg2: memref<5x32x128xbf16, #tpu.memory_space<vmem>>, %arg3: memref<1x128xf32, #tpu.memory_space<vmem>>, %arg4: memref<16x128xf32, #tpu.memory_space<vmem>>, %arg5: memref<128x32xbf16, #tpu.memory_space<vmem>>, %arg6: memref<1x32xf32, #tpu.memory_space<vmem>>, %arg7: memref<32x128xbf16, #tpu.memory_space<vmem>>, %arg8: memref<1x128xf32, #tpu.memory_space<vmem>>, %arg9: memref<8x128xf32, #tpu.memory_space<vmem>>) attributes {dimension_semantics = [#tpu.dimension_semantics<parallel>], iteration_bounds = array<i64: 1>, scalar_prefetch = 0 : i64, scratch_operands = 0 : i64, tpu.core_type = #tpu.core_type<tc>, window_params = [{transform_indices = @transform_0, window_bounds = array<i64: 8, 24, 32>}, {pipeline_mode = #tpu.pipeline_mode<synchronous>, transform_indices = @transform_1, window_bounds = array<i64: 5, 32, 128>}, {pipeline_mode = #tpu.pipeline_mode<synchronous>, transform_indices = @transform_2, window_bounds = array<i64: 1, 128>}, {pipeline_mode = #tpu.pipeline_mode<synchronous>, transform_indices = @transform_3, window_bounds = array<i64: 16, 128>}, {pipeline_mode = #tpu.pipeline_mode<synchronous>, transform_indices = @transform_4, window_bounds = array<i64: 128, 32>}, {pipeline_mode = #tpu.pipeline_mode<synchronous>, transform_indices = @transform_5, window_bounds = array<i64: 1, 32>}, {pipeline_mode = #tpu.pipeline_mode<synchronous>, transform_indices = @transform_6, window_bounds = array<i64: 32, 128>}, {pipeline_mode = #tpu.pipeline_mode<synchronous>, transform_indices = @transform_7, window_bounds = array<i64: 1, 128>}, {transform_indices = @transform_8, window_bounds = array<i64: 8, 128>}]} {
    %c0 = arith.constant 0 : index
    %c0_0 = arith.constant 0 : index
    %c0_1 = arith.constant 0 : index
    %0 = vector.load %arg1[%c0, %c0_0, %c0_1] : memref<8x24x32xf32, #tpu.memory_space<vmem>>, vector<8x24x32xf32>
    %1 = arith.truncf %0 : vector<8x24x32xf32> to vector<8x24x32xbf16>
    %cst = arith.constant 0.000000e+00 : f32
    %2 = vector.broadcast %cst : f32 to vector<128x128xf32>
    %3 = vector.extract_strided_slice %1 {offsets = [0, 0, 0], sizes = [8, 16, 32], strides = [1, 1, 1]} : vector<8x24x32xbf16> to vector<8x16x32xbf16>
    %4 = vector.shape_cast %3 : vector<8x16x32xbf16> to vector<128x32xbf16>
    %c0_2 = arith.constant 0 : index
    %c0_3 = arith.constant 0 : index
    %c0_4 = arith.constant 0 : index
    %5 = vector.load %arg2[%c0_2, %c0_3, %c0_4] : memref<5x32x128xbf16, #tpu.memory_space<vmem>>, vector<1x32x128xbf16>
    %6 = vector.shape_cast %5 : vector<1x32x128xbf16> to vector<32x128xbf16>
    %cst_5 = arith.constant dense<0.000000e+00> : vector<128x128xf32>
    %7 = tpu.matmul %4, %6, %cst_5 {dimension_numbers = #tpu.dot_dimension_numbers<[1], [0], [0], [1], [0, 0, 1, 1], [], []>} : vector<128x32xbf16>, vector<32x128xbf16>, vector<128x128xf32> -> vector<128x128xf32>
    %8 = arith.addf %2, %7 : vector<128x128xf32>
    %9 = vector.extract_strided_slice %1 {offsets = [0, 1, 0], sizes = [8, 16, 32], strides = [1, 1, 1]} : vector<8x24x32xbf16> to vector<8x16x32xbf16>
    %10 = vector.shape_cast %9 : vector<8x16x32xbf16> to vector<128x32xbf16>
    %c1 = arith.constant 1 : index
    %c0_6 = arith.constant 0 : index
    %c0_7 = arith.constant 0 : index
    %11 = vector.load %arg2[%c1, %c0_6, %c0_7] : memref<5x32x128xbf16, #tpu.memory_space<vmem>>, vector<1x32x128xbf16>
    %12 = vector.shape_cast %11 : vector<1x32x128xbf16> to vector<32x128xbf16>
    %cst_8 = arith.constant dense<0.000000e+00> : vector<128x128xf32>
    %13 = tpu.matmul %10, %12, %cst_8 {dimension_numbers = #tpu.dot_dimension_numbers<[1], [0], [0], [1], [0, 0, 1, 1], [], []>} : vector<128x32xbf16>, vector<32x128xbf16>, vector<128x128xf32> -> vector<128x128xf32>
    %14 = arith.addf %8, %13 : vector<128x128xf32>
    %15 = vector.extract_strided_slice %1 {offsets = [0, 2, 0], sizes = [8, 16, 32], strides = [1, 1, 1]} : vector<8x24x32xbf16> to vector<8x16x32xbf16>
    %16 = vector.shape_cast %15 : vector<8x16x32xbf16> to vector<128x32xbf16>
    %c2 = arith.constant 2 : index
    %c0_9 = arith.constant 0 : index
    %c0_10 = arith.constant 0 : index
    %17 = vector.load %arg2[%c2, %c0_9, %c0_10] : memref<5x32x128xbf16, #tpu.memory_space<vmem>>, vector<1x32x128xbf16>
    %18 = vector.shape_cast %17 : vector<1x32x128xbf16> to vector<32x128xbf16>
    %cst_11 = arith.constant dense<0.000000e+00> : vector<128x128xf32>
    %19 = tpu.matmul %16, %18, %cst_11 {dimension_numbers = #tpu.dot_dimension_numbers<[1], [0], [0], [1], [0, 0, 1, 1], [], []>} : vector<128x32xbf16>, vector<32x128xbf16>, vector<128x128xf32> -> vector<128x128xf32>
    %20 = arith.addf %14, %19 : vector<128x128xf32>
    %21 = vector.extract_strided_slice %1 {offsets = [0, 3, 0], sizes = [8, 16, 32], strides = [1, 1, 1]} : vector<8x24x32xbf16> to vector<8x16x32xbf16>
    %22 = vector.shape_cast %21 : vector<8x16x32xbf16> to vector<128x32xbf16>
    %c3 = arith.constant 3 : index
    %c0_12 = arith.constant 0 : index
    %c0_13 = arith.constant 0 : index
    %23 = vector.load %arg2[%c3, %c0_12, %c0_13] : memref<5x32x128xbf16, #tpu.memory_space<vmem>>, vector<1x32x128xbf16>
    %24 = vector.shape_cast %23 : vector<1x32x128xbf16> to vector<32x128xbf16>
    %cst_14 = arith.constant dense<0.000000e+00> : vector<128x128xf32>
    %25 = tpu.matmul %22, %24, %cst_14 {dimension_numbers = #tpu.dot_dimension_numbers<[1], [0], [0], [1], [0, 0, 1, 1], [], []>} : vector<128x32xbf16>, vector<32x128xbf16>, vector<128x128xf32> -> vector<128x128xf32>
    %26 = arith.addf %20, %25 : vector<128x128xf32>
    %27 = vector.extract_strided_slice %1 {offsets = [0, 4, 0], sizes = [8, 16, 32], strides = [1, 1, 1]} : vector<8x24x32xbf16> to vector<8x16x32xbf16>
    %28 = vector.shape_cast %27 : vector<8x16x32xbf16> to vector<128x32xbf16>
    %c4 = arith.constant 4 : index
    %c0_15 = arith.constant 0 : index
    %c0_16 = arith.constant 0 : index
    %29 = vector.load %arg2[%c4, %c0_15, %c0_16] : memref<5x32x128xbf16, #tpu.memory_space<vmem>>, vector<1x32x128xbf16>
    %30 = vector.shape_cast %29 : vector<1x32x128xbf16> to vector<32x128xbf16>
    %cst_17 = arith.constant dense<0.000000e+00> : vector<128x128xf32>
    %31 = tpu.matmul %28, %30, %cst_17 {dimension_numbers = #tpu.dot_dimension_numbers<[1], [0], [0], [1], [0, 0, 1, 1], [], []>} : vector<128x32xbf16>, vector<32x128xbf16>, vector<128x128xf32> -> vector<128x128xf32>
    %32 = arith.addf %26, %31 : vector<128x128xf32>
    %33 = vector.shape_cast %32 : vector<128x128xf32> to vector<8x16x128xf32>
    %c0_18 = arith.constant 0 : index
    %c0_19 = arith.constant 0 : index
    %34 = vector.load %arg3[%c0_18, %c0_19] : memref<1x128xf32, #tpu.memory_space<vmem>>, vector<1x128xf32>
    %35 = vector.shape_cast %34 : vector<1x128xf32> to vector<1x1x128xf32>
    %36 = vector.broadcast %35 : vector<1x1x128xf32> to vector<8x16x128xf32>
    %37 = arith.addf %33, %36 : vector<8x16x128xf32>
    %cst_20 = arith.constant 0.000000e+00 : f32
    %38 = vector.broadcast %cst_20 : f32 to vector<8x16x128xf32>
    %39 = arith.maximumf %37, %38 : vector<8x16x128xf32>
    %c0_21 = arith.constant 0 : index
    %c0_22 = arith.constant 0 : index
    %40 = vector.load %arg4[%c0_21, %c0_22] : memref<16x128xf32, #tpu.memory_space<vmem>>, vector<16x128xf32>
    %41 = vector.shape_cast %40 : vector<16x128xf32> to vector<1x16x128xf32>
    %42 = vector.broadcast %41 : vector<1x16x128xf32> to vector<8x16x128xf32>
    %43 = arith.mulf %39, %42 : vector<8x16x128xf32>
    %cst_23 = arith.constant dense<0xFF800000> : vector<8x128xf32>
    %44 = vector.multi_reduction <maximumf>, %43, %cst_23 [1] : vector<8x16x128xf32> to vector<8x128xf32>
    %cst_24 = arith.constant 0.000000e+00 : f32
    %45 = vector.broadcast %cst_24 : f32 to vector<8x128xf32>
    %46 = arith.maximumf %44, %45 : vector<8x128xf32>
    %c0_25 = arith.constant 0 : index
    %c0_26 = arith.constant 0 : index
    %47 = vector.load %arg6[%c0_25, %c0_26] : memref<1x32xf32, #tpu.memory_space<vmem>>, vector<1x32xf32>
    %48 = arith.truncf %46 : vector<8x128xf32> to vector<8x128xbf16>
    %c0_27 = arith.constant 0 : index
    %c0_28 = arith.constant 0 : index
    %49 = vector.load %arg5[%c0_27, %c0_28] : memref<128x32xbf16, #tpu.memory_space<vmem>>, vector<128x32xbf16>
    %cst_29 = arith.constant dense<0.000000e+00> : vector<8x32xf32>
    %50 = tpu.matmul %48, %49, %cst_29 {dimension_numbers = #tpu.dot_dimension_numbers<[1], [0], [0], [1], [0, 0, 1, 1], [], []>} : vector<8x128xbf16>, vector<128x32xbf16>, vector<8x32xf32> -> vector<8x32xf32>
    %51 = vector.broadcast %47 : vector<1x32xf32> to vector<8x32xf32>
    %52 = arith.addf %51, %50 : vector<8x32xf32>
    %cst_30 = arith.constant 0.000000e+00 : f32
    %53 = vector.broadcast %cst_30 : f32 to vector<8x32xf32>
    %54 = arith.maximumf %52, %53 : vector<8x32xf32>
    %c0_31 = arith.constant 0 : index
    %c0_32 = arith.constant 0 : index
    %55 = vector.load %arg8[%c0_31, %c0_32] : memref<1x128xf32, #tpu.memory_space<vmem>>, vector<1x128xf32>
    %56 = arith.truncf %54 : vector<8x32xf32> to vector<8x32xbf16>
    %c0_33 = arith.constant 0 : index
    %c0_34 = arith.constant 0 : index
    %57 = vector.load %arg7[%c0_33, %c0_34] : memref<32x128xbf16, #tpu.memory_space<vmem>>, vector<32x128xbf16>
    %cst_35 = arith.constant dense<0.000000e+00> : vector<8x128xf32>
    %58 = tpu.matmul %56, %57, %cst_35 {dimension_numbers = #tpu.dot_dimension_numbers<[1], [0], [0], [1], [0, 0, 1, 1], [], []>} : vector<8x32xbf16>, vector<32x128xbf16>, vector<8x128xf32> -> vector<8x128xf32>
    %59 = vector.broadcast %55 : vector<1x128xf32> to vector<8x128xf32>
    %60 = arith.addf %59, %58 : vector<8x128xf32>
    %c0_36 = arith.constant 0 : index
    %c0_37 = arith.constant 0 : index
    %61 = vector.load %arg9[%c0_36, %c0_37] : memref<8x128xf32, #tpu.memory_space<vmem>>, vector<8x128xf32>
    tpu.vector_store %arg9[%c0_36, %c0_37], %60 {strides = array<i32>} : memref<8x128xf32, #tpu.memory_space<vmem>>, vector<8x128xf32>,
    return
  }
  func.func @transform_0(%arg0: i32) -> (i32, i32, i32) {
    %c0_i32 = arith.constant 0 : i32
    %c0_i32_0 = arith.constant 0 : i32
    %c0_i32_1 = arith.constant 0 : i32
    return %arg0, %c0_i32, %c0_i32_0 : i32, i32, i32
  }
  func.func @transform_1(%arg0: i32) -> (i32, i32, i32) {
    %c0_i32 = arith.constant 0 : i32
    %c0_i32_0 = arith.constant 0 : i32
    %c0_i32_1 = arith.constant 0 : i32
    %c0_i32_2 = arith.constant 0 : i32
    return %c0_i32, %c0_i32_0, %c0_i32_1 : i32, i32, i32
  }
  func.func @transform_2(%arg0: i32) -> (i32, i32) {
    %c0_i32 = arith.constant 0 : i32
    %c0_i32_0 = arith.constant 0 : i32
    %c0_i32_1 = arith.constant 0 : i32
    return %c0_i32, %c0_i32_0 : i32, i32
  }
  func.func @transform_3(%arg0: i32) -> (i32, i32) {
    %c0_i32 = arith.constant 0 : i32
    %c0_i32_0 = arith.constant 0 : i32
    %c0_i32_1 = arith.constant 0 : i32
    return %c0_i32, %c0_i32_0 : i32, i32
  }
  func.func @transform_4(%arg0: i32) -> (i32, i32) {
    %c0_i32 = arith.constant 0 : i32
    %c0_i32_0 = arith.constant 0 : i32
    %c0_i32_1 = arith.constant 0 : i32
    return %c0_i32, %c0_i32_0 : i32, i32
  }
  func.func @transform_5(%arg0: i32) -> (i32, i32) {
    %c0_i32 = arith.constant 0 : i32
    %c0_i32_0 = arith.constant 0 : i32
    %c0_i32_1 = arith.constant 0 : i32
    return %c0_i32, %c0_i32_0 : i32, i32
  }
  func.func @transform_6(%arg0: i32) -> (i32, i32) {
    %c0_i32 = arith.constant 0 : i32
    %c0_i32_0 = arith.constant 0 : i32
    %c0_i32_1 = arith.constant 0 : i32
    return %c0_i32, %c0_i32_0 : i32, i32
  }
  func.func @transform_7(%arg0: i32) -> (i32, i32) {
    %c0_i32 = arith.constant 0 : i32
    %c0_i32_0 = arith.constant 0 : i32
    %c0_i32_1 = arith.constant 0 : i32
    return %c0_i32, %c0_i32_0 : i32, i32
  }
  func.func @transform_8(%arg0: i32) -> (i32, i32) {
    %c0_i32 = arith.constant 0 : i32
    %c0_i32_0 = arith.constant 0 : i32
    return %arg0, %c0_i32 : i32, i32
  }
}

</mosaic_0001>

<bundles_post_ra>
// kernel: tpu_custom_call.1
= control target key start
LH: loop header
LB: loop body
LE: loop exit
PB: predicated region body
PF: predicated region fallthrough
CT: control target
= control target key end

     0   :  { %13 = vsyncpa [#allocation3], 0  ;;  %s2359_s0 = inlined_call_operand.hbm [shape: f32[8,24,32], index: 0, kind: input, shape index: {}]   ;;  %s2360_s1 = inlined_call_operand.vmem [shape: bf16[5,32,128], index: 1, kind: input, shape index: {}]   ;;  %s2361_s2 = inlined_call_operand.vmem [shape: f32[1,128], index: 2, kind: input, shape index: {}]   ;;  %s2362_s3 = inlined_call_operand.hbm [shape: f32[16,128], index: 3, kind: input, shape index: {}]   ;;  %s2363_s4 = inlined_call_operand.vmem [shape: bf16[128,32], index: 4, kind: input, shape index: {}]   ;;  %s2364_s5 = inlined_call_operand.vmem [shape: f32[1,32], index: 5, kind: input, shape index: {}]   ;;  %s2365_s6 = inlined_call_operand.vmem [shape: bf16[32,128], index: 6, kind: input, shape index: {}]   ;;  %s2366_s7 = inlined_call_operand.vmem [shape: f32[1,128], index: 7, kind: input, shape index: {}]   ;;  %s2367_s8 = inlined_call_operand.hbm [shape: f32[8,128], index: 8, kind: output, shape index: {}]  }
   0x1   :  { %14 = vsyncpa [#allocation6], 0 }
   0x2   :  { %15 = vsyncpa [#allocation4], 0  ;;  %s1857_s27 = smov [#allocation2]   ;;  %s1785_s9 = scalar_lea.hbm %s2359_s0, 3072 }
   0x3   :  { %s21_s28 = sshll.u32 %s1857_s27, 4  ;;  %p1786_p0 = scmp.ne.s32.totalorder %s2359_s0, %s1785_s9  ;;  %s22_s28 = int_to_ptr.vmem [resolvable:$true] %s21_s28 }
   0x4   :  { %p1789_p1 = scmp.lt.u32.totalorder %s1785_s9, %s2359_s0 }
   0x6   :  { %p1791_p2 = pnand %p1789_p1, %p1786_p0 }
   0x8   :  { %1794 = shalt.err (!%p1791_p2)
}
   0x9   :  { %s1795_s14 = scalar_lea.vmem %s22_s28, 3072  ;;  %p1800_p4 = scmp.lt.s32.totalorder %s22_s28, %s22_s28 }
   0xa   :  { %p1796_p3 = scmp.ne.s32.totalorder %s22_s28, %s1795_s14  ;;  %p1801_p5 = scmp.lt.s32.totalorder %s1795_s14, %s1795_s14 }
   0xc   :  { %p1802_p6 = por %p1801_p5, %p1800_p4 }
   0xe   :  { %p1803_p7 = pnand %p1802_p6, %p1796_p3 }
  0x10   :  { %1806 = shalt.err (!%p1803_p7)
}
  0x11   :  { %s1858_s15 = smov 128   ;;  %s1859_s16 = smov 8  }
  0x12   :  { %27 = dma.hbm_to_vmem [thread:$0]  %s2359_s0, 3072, %s22_s28, [#allocation3], %s1858_s15, %s1858_s15, %s1859_s16  }
  0x13   :  { %s1860_s19 = smov [#allocation5]   ;;  %s1807_s23 = scalar_lea.hbm %s2362_s3, 256 }
  0x14   :  { %s37_s20 = sshll.u32 %s1860_s19, 4  ;;  %p1808_p8 = scmp.ne.s32.totalorder %s2362_s3, %s1807_s23  ;;  %s38_s20 = int_to_ptr.vmem [resolvable:$true] %s37_s20 }
  0x15   :  { %p1811_p9 = scmp.lt.u32.totalorder %s1807_s23, %s2362_s3 }
  0x17   :  { %p1813_p10 = pnand %p1811_p9, %p1808_p8 }
  0x19   :  { %1816 = shalt.err (!%p1813_p10)
}
  0x1a   :  { %s1817_s29 = scalar_lea.vmem %s38_s20, 256  ;;  %p1822_p12 = scmp.lt.s32.totalorder %s38_s20, %s38_s20 }
  0x1b   :  { %p1818_p11 = scmp.ne.s32.totalorder %s38_s20, %s1817_s29  ;;  %p1823_p13 = scmp.lt.s32.totalorder %s1817_s29, %s1817_s29 }
  0x1d   :  { %p1824_p0 = por %p1823_p13, %p1822_p12 }
  0x1f   :  { %p1825_p1 = pnand %p1824_p0, %p1818_p11 }
  0x21   :  { %1828 = shalt.err (!%p1825_p1)
}
  0x22   :  { %43 = dma.hbm_to_vmem [thread:$0]  %s2362_s3, 256, %s38_s20, [#allocation6], %s1858_s15, %s1858_s15, %s1859_s16  }
  0x23   :  { %1851 = dma.done.wait [#allocation3], 3072  }
  0x24   :  { %1852 = vsyncadd [#allocation3], 4294964224 }
  0x25   :  { %1853 = dma.done.wait [#allocation6], 256  }
  0x26   :  { %1854 = vsyncadd [#allocation6], 4294967040  ;;  %v1765_v0 = vld [vmem:[%s2360_s1 + $0x10] sm:$0xff]   ;;  %v1766_v1 = vld [vmem:[%s2360_s1 + $0x20] sm:$0xff]   ;;  %vm103_vm0 = vsmask.f32 7424 }
  0x27   :  { %1566 = vmatprep.subr.bf16.mxu1 %v1765_v0  ;;  %v1767_v2 = vld [vmem:[%s2360_s1 + $0x18] sm:$0xff]   ;;  %1606 = vmatprep.subr.bf16.mxu0 %v1766_v1  ;;  %v1768_v3 = vld [vmem:[%s2360_s1 + $0x28] sm:$0xff]   ;;  %v59_v4 = vld [vmem:[#allocation2] sm:$0xff]  ;;  %vm217_vm1 = vcmask 261120   ;;  %vm480_vm2 = vcmask 1046528   ;;  %vm886_vm4 = vcmask 1045504  }
  0x28   :  { %1567 = vmatpush3.bf16.msra.mxu1 %v1765_v0  ;;  %1607 = vmatpush3.bf16.msra.mxu0 %v1766_v1  ;;  %v60_v5 = vld [vmem:[#allocation2 + $0x8] sm:$0xff]  ;;  %v61_v6 = vld [vmem:[#allocation2 + $0x10] sm:$0xff]  ;;  %v62_v9 = vld [vmem:[#allocation2 + $0x18] sm:$0xff]  ;;  %vm659_vm3 = vsmask.f32 6400  ;;  %vm1862_vm5 = vmmov 0  }
  0x29   :  { %1568 = vmatprep.subr.bf16.mxu1 %v1767_v2  ;;  %1608 = vmatprep.subr.bf16.mxu0 %v1768_v3  ;;  %v1945_v7 = vpack.c.bf16 %v60_v5, %v59_v4  ;;  %v1947_v8 = vpack.c.bf16 %v61_v6, %v61_v6  ;;  %v63_v10 = vld [vmem:[#allocation2 + $0x20] sm:$0xff]  ;;  %v64_v11 = vld [vmem:[#allocation2 + $0x28] sm:$0xff]  ;;  %v1769_v14 = vld [vmem:[%s2360_s1 + $0x30] sm:$0xff]   ;;  %vm1227_vm6 = vcmask 1041409   ;;  %vm1229_vm7 = vcmask 1042434   ;;  %s1863_s26 = smov [#allocation7]  }
  0x2a   :  { %v1949_v12 = vpack.c.bf16 %v63_v10, %v62_v9  ;;  %v1951_v13 = vpack.c.bf16 %v64_v11, %v64_v11  ;;  %v65_v23 = vld [vmem:[#allocation2 + $0x30] sm:$0xff]  ;;  %v66_v24 = vld [vmem:[#allocation2 + $0x38] sm:$0xff]  ;;  %v67_v27 = vld [vmem:[#allocation2 + $0x40] sm:$0xff]  ;;  %vm1231_vm8 = vcmask 1043459   ;;  %vm1233_vm9 = vcmask 1044484  }
  0x2b   :  { %v105_v15 = vshrl.u32 %v1945_v7, 16  ;;  %v107_v16 = vshll.u32 %v1945_v7, 16  ;;  %v112_v17 = vshll.u32 %v1947_v8, 16  ;;  %v481_v18 = vrot.slane %v1945_v7, 1  ;;  %v68_v28 = vld [vmem:[#allocation2 + $0x48] sm:$0xff]  ;;  %v69_v29 = vld [vmem:[#allocation2 + $0x50] sm:$0xff] }
  0x2c   :  { %1569 = vmatpush3.bf16.msra.mxu1 %v1767_v2  ;;  %1609 = vmatpush3.bf16.msra.mxu0 %v1768_v3  ;;  %v482_v19 = vrot.slane %v1947_v8, 1  ;;  %v117_v20 = vshrl.u32 %v1949_v12, 16  ;;  %v119_v21 = vshll.u32 %v1949_v12, 16  ;;  %v124_v22 = vshll.u32 %v1951_v13, 16  ;;  %v70_v33 = vld [vmem:[#allocation2 + $0x58] sm:$0xff]  ;;  %v71_v34 = vld [vmem:[#allocation2 + $0x60] sm:$0xff] }
  0x2d   :  { %v109_v25 = vrot.slane %v107_v16, 1  ;;  %v114_v26 = vrot.slane %v112_v17, 1  ;;  %1626 = vmatprep.subr.bf16.mxu0 %v1769_v14  ;;  %v72_v35 = vld [vmem:[#allocation2 + $0x68] sm:$0xff]  ;;  %v1971_v37 = vrot.slane %v105_v15, 1  ;;  %v1973_v38 = vrot.slane %v112_v17, 2  ;;  %v1770_v48 = vld [vmem:[%s2360_s1 + $0x38] sm:$0xff]  }
  0x2e   :  { %v483_v30 = vsel %vm480_vm2, %v481_v18, %v482_v19  ;;  %v121_v31 = vrot.slane %v119_v21, 1  ;;  %v126_v32 = vrot.slane %v124_v22, 1  ;;  %v484_v39 = vrot.slane %v1949_v12, 1  ;;  %v73_v53 = vld [vmem:[#allocation2 + $0x70] sm:$0xff]  ;;  %v74_v58 = vld [vmem:[#allocation2 + $0x78] sm:$0xff]  ;;  %v75_v59 = vld [vmem:[#allocation2 + $0x80] sm:$0xff] }
  0x2f   :  { %v110_v36 = vor.u32 %v109_v25, %v105_v15  ;;  %1610 = vmatprep.mubr.msk.bf16.mxu0 %vm217_vm1, %v483_v30  ;;  %v485_v41 = vrot.slane %v1951_v13, 1  ;;  %v1980_v42 = vpack.c.bf16 %v66_v24, %v65_v23  ;;  %v1982_v43 = vpack.c.bf16 %v67_v27, %v67_v27  ;;  %v76_v0 = vld [vmem:[#allocation2 + $0x88] sm:$0xff]  ;;  %v77_v1 = vld [vmem:[#allocation2 + $0x90] sm:$0xff]  ;;  %v78_v2 = vld [vmem:[#allocation2 + $0x98] sm:$0xff] }
  0x30   :  { %v122_v40 = vor.u32 %v121_v31, %v117_v20  ;;  %v1985_v45 = vpack.c.bf16 %v69_v29, %v68_v28  ;;  %v1987_v46 = vpack.c.bf16 %v70_v33, %v70_v33  ;;  %v1989_v47 = vpack.c.bf16 %v72_v35, %v71_v34  ;;  %v1771_v9 = vld [vmem:[%s2360_s1] sm:$0xff]   ;;  %v1772_v10 = vld [vmem:[%s2360_s1 + $0x8] sm:$0xff]  }
  0x31   :  { %v115_v44 = vsel %vm103_vm0, %v110_v36, %v114_v26  ;;  %v486_v50 = vsel %vm480_vm2, %v484_v39, %v485_v41  ;;  %v129_v51 = vshrl.u32 %v1980_v42, 16  ;;  %v131_v52 = vshll.u32 %v1980_v42, 16  ;;  %v2033_v18 = vld [vmem:[%s2360_s1 + $0x40] sm:$0xff]   ;;  %1586 = vmatprep.subr.bf16.mxu1 %v1771_v9  ;;  %v80_v41 = vld [vmem:[#allocation2 + $0xa8] sm:$0xff] }
  0x32   :  { %1570 = vmatprep.mubr.msk.bf16.mxu1 %vm217_vm1, %v115_v44  ;;  %v127_v49 = vsel %vm103_vm0, %v122_v40, %v126_v32  ;;  %1611 = vmatmul.mubr.msk.bf16.vlgmr.msra.gmra.mrb[0].mxu0 %vm217_vm1, %v486_v50  ;;  %v136_v54 = vshll.u32 %v1982_v43, 16  ;;  %v487_v55 = vrot.slane %v1980_v42, 1  ;;  %v488_v56 = vrot.slane %v1982_v43, 1  ;;  %v79_v30 = vld [vmem:[#allocation2 + $0xa0] sm:$0xff] }
  0x33   :  { %1571 = vmatmul.mubr.msk.bf16.vlgmr.msra.gmra.mrb[0].mxu1 %vm217_vm1, %v127_v49  ;;  %v141_v57 = vshrl.u32 %v1985_v45, 16  ;;  %1627 = vmatpush3.bf16.msra.mxu0 %v1769_v14  ;;  %v133_v60 = vrot.slane %v131_v52, 1  ;;  %v143_v61 = vshll.u32 %v1985_v45, 16  ;;  %v148_v62 = vshll.u32 %v1987_v46, 16 }
  0x34   :  { %v490_v63 = vrot.slane %v1985_v45, 1  ;;  %v138_v3 = vrot.slane %v136_v54, 1  ;;  %v489_v4 = vsel %vm480_vm2, %v487_v55, %v488_v56  ;;  %v491_v5 = vrot.slane %v1987_v46, 1  ;;  %1628 = vmatprep.subr.bf16.mxu0 %v1770_v48  ;;  %1587 = vmatpush3.bf16.msra.mxu1 %v1771_v9 }
  0x35   :  { %v2014_v6 = vpack.c.bf16 %v73_v53, %v73_v53  ;;  %v134_v11 = vor.u32 %v133_v60, %v129_v51  ;;  %1614 = vmatprep.mubr.msk.bf16.mxu0 %vm217_vm1, %v489_v4  ;;  %v145_v14 = vrot.slane %v143_v61, 1  ;;  %v150_v15 = vrot.slane %v148_v62, 1  ;;  %1588 = vmatprep.subr.bf16.mxu1 %v1772_v10  ;;  %v81_v53 = vld [vmem:[#allocation2 + $0xb0] sm:$0xff]  ;;  %v82_v60 = vld [vmem:[#allocation2 + $0xb8] sm:$0xff] }
  0x36   :  { %v153_v17 = vshrl.u32 %v1989_v47, 16  ;;  %v492_v19 = vsel %vm480_vm2, %v490_v63, %v491_v5  ;;  %v155_v23 = vshll.u32 %v1989_v47, 16  ;;  %v493_v25 = vrot.slane %v1989_v47, 1 }
  0x37   :  { %v160_v24 = vshll.u32 %v2014_v6, 16  ;;  %v139_v26 = vsel %vm103_vm0, %v134_v11, %v138_v3  ;;  %v146_v27 = vor.u32 %v145_v14, %v141_v57  ;;  %v494_v28 = vrot.slane %v2014_v6, 1  ;;  %1629 = vmatpush3.bf16.msra.mxu0 %v1770_v48 }
  0x38   :  { %v2043_v29 = vpack.c.bf16 %v75_v59, %v74_v58  ;;  %1574 = vmatprep.mubr.msk.bf16.mxu1 %vm217_vm1, %v139_v26  ;;  %v157_v31 = vrot.slane %v155_v23, 1  ;;  %v2050_v33 = vpack.c.bf16 %v76_v0, %v76_v0  ;;  %v2052_v34 = vpack.c.bf16 %v78_v2, %v77_v1  ;;  %1646 = vmatprep.subr.bf16.mxu0 %v2033_v18 }
  0x39   :  { %v162_v32 = vrot.slane %v160_v24, 1  ;;  %v151_v35 = vsel %vm103_vm0, %v146_v27, %v150_v15  ;;  %v495_v36 = vsel %vm480_vm2, %v493_v25, %v494_v28  ;;  %v2069_v56 = vpack.c.bf16 %v79_v30, %v79_v30  ;;  %1589 = vmatpush3.bf16.msra.mxu1 %v1772_v10 }
  0x3a   :  { %v165_v39 = vshrl.u32 %v2043_v29, 16  ;;  %v167_v40 = vshll.u32 %v2043_v29, 16  ;;  %1615 = vmatmul.mubr.msk.bf16.gmra.mrb[4].mxu0 %vm217_vm1, %v492_v19  ;;  %v158_v44 = vor.u32 %v157_v31, %v153_v17  ;;  %v172_v48 = vshll.u32 %v2050_v33, 16 }
  0x3b   :  { %1575 = vmatmul.mubr.msk.bf16.gmra.mrb[4].mxu1 %vm217_vm1, %v151_v35  ;;  %v496_v49 = vrot.slane %v2043_v29, 1  ;;  %v497_v50 = vrot.slane %v2050_v33, 1  ;;  %1618 = vmatprep.mubr.msk.bf16.mxu0 %vm217_vm1, %v495_v36  ;;  %v177_v58 = vshrl.u32 %v2052_v34, 16  ;;  %v179_v59 = vshll.u32 %v2052_v34, 16 }
  0x3c   :  { %v169_v55 = vrot.slane %v167_v40, 1  ;;  %v163_v63 = vsel %vm103_vm0, %v158_v44, %v162_v32  ;;  %v174_v0 = vrot.slane %v172_v48, 1  ;;  %v499_v1 = vrot.slane %v2052_v34, 1 }
  0x3d   :  { %1578 = vmatprep.mubr.msk.bf16.mxu1 %vm217_vm1, %v163_v63  ;;  %v181_v3 = vrot.slane %v179_v59, 1  ;;  %v184_v4 = vshll.u32 %v2069_v56, 16  ;;  %v500_v5 = vrot.slane %v2069_v56, 1  ;;  %v498_v9 = vsel %vm480_vm2, %v496_v49, %v497_v50 }
  0x3e   :  { %v170_v2 = vor.u32 %v169_v55, %v165_v39  ;;  %v2085_v10 = vpack.c.bf16 %v81_v53, %v80_v41  ;;  %v2087_v11 = vpack.c.bf16 %v82_v60, %v82_v60  ;;  %v663_v14 = vshrl.u32 %v1947_v8, 16 }
  0x3f   :  { %v182_v19 = vor.u32 %v181_v3, %v177_v58  ;;  %v186_v25 = vrot.slane %v184_v4, 1  ;;  %v661_v26 = vrot.slane %v107_v16, 2  ;;  %v501_v27 = vsel %vm480_vm2, %v499_v1, %v500_v5 }
  0x40   :  { %v175_v15 = vsel %vm103_vm0, %v170_v2, %v174_v0  ;;  %v189_v28 = vshrl.u32 %v2085_v10, 16  ;;  %v191_v30 = vshll.u32 %v2085_v10, 16  ;;  %v196_v31 = vshll.u32 %v2087_v11, 16 }
  0x41   :  { %v187_v32 = vsel %vm103_vm0, %v182_v19, %v186_v25  ;;  %v665_v35 = vrot.slane %v663_v14, 1  ;;  %v502_v16 = vrot.slane %v2085_v10, 1  ;;  %v503_v41 = vrot.slane %v2087_v11, 1 }
  0x42   :  { %1619 = vmatmul.mubr.msk.bf16.gmra.mrb[8].mxu0 %vm217_vm1, %v498_v9  ;;  %v193_v36 = vrot.slane %v191_v30, 1  ;;  %v198_v44 = vrot.slane %v196_v31, 1  ;;  %v672_v49 = vshrl.u32 %v1951_v13, 16  ;;  %v662_v53 = vor.u32 %v661_v26, %v1971_v37 }
  0x43   :  { %1579 = vmatmul.mubr.msk.bf16.gmra.mrb[8].mxu1 %vm217_vm1, %v175_v15  ;;  %1622 = vmatprep.mubr.msk.bf16.mxu0 %vm217_vm1, %v501_v27  ;;  %v667_v55 = vor.u32 %v1973_v38, %v665_v35  ;;  %v681_v60 = vshrl.u32 %v1982_v43, 16  ;;  %v669_v63 = vrot.slane %v117_v20, 1  ;;  %v670_v0 = vrot.slane %v119_v21, 2 }
  0x44   :  { %1582 = vmatprep.mubr.msk.bf16.mxu1 %vm217_vm1, %v187_v32  ;;  %v194_v50 = vor.u32 %v193_v36, %v189_v28  ;;  %v675_v1 = vrot.slane %v124_v22, 2  ;;  %v504_v3 = vsel %vm480_vm2, %v502_v16, %v503_v41  ;;  %v674_v5 = vrot.slane %v672_v49, 1 }
  0x45   :  { %v668_v37 = vsel %vm659_vm3, %v662_v53, %v667_v55  ;;  %v678_v38 = vrot.slane %v129_v51, 1  ;;  %v679_v9 = vrot.slane %v131_v52, 2  ;;  %v683_v20 = vrot.slane %v681_v60, 1 }
  0x46   :  { %v199_v2 = vsel %vm103_vm0, %v194_v50, %v198_v44  ;;  %v684_v21 = vrot.slane %v136_v54, 2  ;;  %v690_v22 = vshrl.u32 %v1987_v46, 16  ;;  %v671_v14 = vor.u32 %v670_v0, %v669_v63 }
  0x47   :  { %v676_v51 = vor.u32 %v675_v1, %v674_v5  ;;  %v699_v15 = vshrl.u32 %v2014_v6, 16  ;;  %v687_v52 = vrot.slane %v141_v57, 1  ;;  %v688_v54 = vrot.slane %v143_v61, 2 }
  0x48   :  { %v696_v19 = vrot.slane %v153_v17, 1  ;;  %v697_v25 = vrot.slane %v155_v23, 2  ;;  %v680_v26 = vor.u32 %v679_v9, %v678_v38  ;;  %v685_v27 = vor.u32 %v684_v21, %v683_v20  ;;  %v1774_v17 = vld [vmem:[%s2360_s1 + $0x48] sm:$0xff]  }
  0x49   :  { %v692_v32 = vrot.slane %v690_v22, 1  ;;  %v693_v35 = vrot.slane %v148_v62, 2  ;;  %v677_v36 = vsel %vm659_vm3, %v671_v14, %v676_v51  ;;  %v701_v16 = vrot.slane %v699_v15, 1 }
  0x4a   :  { %1623 = vmatmul.mubr.msk.bf16.gmra.mrb[12].mxu0 %vm217_vm1, %v504_v3  ;;  %v702_v57 = vrot.slane %v160_v24, 2  ;;  %v689_v41 = vor.u32 %v688_v54, %v687_v52  ;;  %v698_v61 = vor.u32 %v697_v25, %v696_v19  ;;  %v890_v23 = vrot.slane %v1949_v12, 2 }
  0x4b   :  { %1583 = vmatmul.mubr.msk.bf16.gmra.mrb[12].mxu1 %vm217_vm1, %v199_v2  ;;  %1630 = vmatprep.mubr.msk.bf16.mxu0 %vm217_vm1, %v668_v37  ;;  %v686_v44 = vsel %vm659_vm3, %v680_v26, %v685_v27  ;;  %v705_v62 = vrot.slane %v165_v39, 1  ;;  %v706_v49 = vrot.slane %v167_v40, 2  ;;  %v891_v50 = vrot.slane %v1951_v13, 2 }
  0x4c   :  { %1590 = vmatprep.mubr.msk.bf16.mxu1 %vm217_vm1, %v1945_v7  ;;  %v694_v24 = vor.u32 %v693_v35, %v692_v32  ;;  %v708_v53 = vshrl.u32 %v2050_v33, 16  ;;  %v896_v55 = vrot.slane %v1985_v45, 2  ;;  %v897_v60 = vrot.slane %v1987_v46, 2 }
  0x4d   :  { %v703_v39 = vor.u32 %v702_v57, %v701_v16  ;;  %v892_v13 = vsel %vm886_vm4, %v890_v23, %v891_v50  ;;  %v899_v40 = vrot.slane %v1989_v47, 2  ;;  %v717_v63 = vshrl.u32 %v2069_v56, 16  ;;  %v1780_v16 = vld [vmem:[%s2363_s4 + $0x28] sm:$0xff]   ;;  %v1781_v57 = vld [vmem:[%s2363_s4 + $0x30] sm:$0xff]  }
  0x4e   :  { %v898_v0 = vsel %vm886_vm4, %v896_v55, %v897_v60  ;;  %v902_v46 = vrot.slane %v2043_v29, 2  ;;  %v905_v2 = vrot.slane %v2052_v34, 2  ;;  %v906_v3 = vrot.slane %v2069_v56, 2 }
  0x4f   :  { %v908_v5 = vrot.slane %v2085_v10, 2  ;;  %v714_v37 = vrot.slane %v177_v58, 1  ;;  %v909_v9 = vrot.slane %v2087_v11, 2  ;;  %v695_v20 = vsel %vm659_vm3, %v689_v41, %v694_v24  ;;  %v1782_v41 = vld [vmem:[%s2363_s4 + $0x38] sm:$0xff]  }
  0x50   :  { %v710_v21 = vrot.slane %v708_v53, 1  ;;  %v715_v22 = vrot.slane %v179_v59, 2  ;;  %v907_v14 = vsel %vm886_vm4, %v905_v2, %v906_v3  ;;  %v704_v51 = vsel %vm659_vm3, %v698_v61, %v703_v39 }
  0x51   :  { %v910_v58 = vsel %vm886_vm4, %v908_v5, %v909_v9  ;;  %v707_v59 = vor.u32 %v706_v49, %v705_v62  ;;  %v726_v52 = vshrl.u32 %v2087_v11, 16  ;;  %v723_v56 = vrot.slane %v189_v28, 1 }
  0x52   :  { %1631 = vmatmul.mubr.msk.bf16.vlgmr.msra.gmra.mrb[0].mxu0 %vm217_vm1, %v677_v36  ;;  %v716_v54 = vor.u32 %v715_v22, %v714_v37  ;;  %v888_v32 = vrot.slane %v1947_v8, 2  ;;  %v1861_v8 = vmov 0.0   ;;  %v1779_v36 = vld [vmem:[%s2363_s4 + $0x20] sm:$0xff]   ;;  %vm1235_vm10 = vcmask 1045509  }
  0x53   :  { %1591 = vmatmul.mubr.msk.bf16.vlgmr.msra.gmra.mrb[0].mxu1 %vm217_vm1, %v1949_v12  ;;  %1647 = vmatpush3.bf16.msra.mxu0 %v2033_v18  ;;  %v900_v12 = vrot.slane %v2014_v6, 2  ;;  %v903_v18 = vrot.slane %v2050_v33, 2  ;;  %v711_v6 = vrot.slane %v172_v48, 2  ;;  %v719_v33 = vrot.slane %v717_v63, 1  ;;  %v2292_v22 = vld [vmem:[#allocation5] sm:$0xff] }
  0x54   :  { %1594 = vmatprep.mubr.msk.bf16.mxu1 %vm217_vm1, %v1980_v42  ;;  %1634 = vmatprep.mubr.msk.bf16.mxu0 %vm217_vm1, %v686_v44  ;;  %v720_v48 = vrot.slane %v184_v4, 2  ;;  %v728_v25 = vrot.slane %v726_v52, 1  ;;  %vm1237_vm11 = vcmask 1046534   ;;  %vm1239_vm12 = vcmask 1047559  }
  0x55   :  { %1648 = vmatprep.subr.bf16.mxu0 %v1774_v17  ;;  %v901_v1 = vsel %vm886_vm4, %v899_v40, %v900_v12  ;;  %v904_v38 = vsel %vm886_vm4, %v902_v46, %v903_v18  ;;  %v712_v15 = vor.u32 %v711_v6, %v710_v21  ;;  %1666 = vmatprep.subr.bf16.mxu1 %v1861_v8  ;;  %v2287_v46 = vld [vmem:[%s2361_s2] ss:$0 sm:$0xff] }
  0x56   :  { %v721_v19 = vor.u32 %v720_v48, %v719_v33 }
  0x57   :  { %1649 = vmatpush3.bf16.msra.mxu0 %v1774_v17  ;;  %v713_v4 = vsel %vm659_vm3, %v707_v59, %v712_v15 }
  0x58   :  { %v722_v26 = vsel %vm659_vm3, %v716_v54, %v721_v19 }
  0x5a   :  { %1635 = vmatmul.mubr.msk.bf16.gmra.mrb[4].mxu0 %vm217_vm1, %v695_v20 }
  0x5b   :  { %1595 = vmatmul.mubr.msk.bf16.gmra.mrb[4].mxu1 %vm217_vm1, %v1985_v45  ;;  %1638 = vmatprep.mubr.msk.bf16.mxu0 %vm217_vm1, %v704_v51  ;;  %v724_v45 = vrot.slane %v191_v30, 2  ;;  %v887_v30 = vrot.slane %v1945_v7, 2  ;;  %v1775_v7 = vld [vmem:[%s2363_s4] sm:$0xff]   ;;  %v2294_v51 = vld [vmem:[#allocation5 + $0x8] sm:$0xff] }
  0x5c   :  { %1598 = vmatprep.mubr.msk.bf16.mxu1 %vm217_vm1, %v1989_v47  ;;  %v729_v47 = vrot.slane %v196_v31, 2  ;;  %1667 = vmatpush3.bf16.msra.mxu1 %v1775_v7 }
  0x5d   :  { %v725_v28 = vor.u32 %v724_v45, %v723_v56  ;;  %v889_v31 = vsel %vm886_vm4, %v887_v30, %v888_v32  ;;  %1668 = vmatprep.subr.bf16.mxu1 %v1861_v8 }
  0x5e   :  { %v730_v27 = vor.u32 %v729_v47, %v728_v25 }
  0x60   :  { %v731_v11 = vsel %vm659_vm3, %v725_v28, %v730_v27 }
  0x62   :  { %1639 = vmatmul.mubr.msk.bf16.gmra.mrb[8].mxu0 %vm217_vm1, %v713_v4 }
  0x63   :  { %1599 = vmatmul.mubr.msk.bf16.gmra.mrb[8].mxu1 %vm217_vm1, %v2043_v29  ;;  %1642 = vmatprep.mubr.msk.bf16.mxu0 %vm217_vm1, %v722_v26  ;;  %v893_v29 = vrot.slane %v1980_v42, 2  ;;  %v1776_v42 = vld [vmem:[%s2363_s4 + $0x8] sm:$0xff]  }
  0x64   :  { %1602 = vmatprep.mubr.msk.bf16.mxu1 %vm217_vm1, %v2052_v34  ;;  %v894_v34 = vrot.slane %v1982_v43, 2  ;;  %1669 = vmatpush3.bf16.msra.mxu1 %v1776_v42  ;;  %v1777_v43 = vld [vmem:[%s2363_s4 + $0x10] sm:$0xff]  }
  0x65   :  { %1670 = vmatprep.subr.bf16.mxu1 %v1861_v8 }
  0x66   :  { %v895_v35 = vsel %vm886_vm4, %v893_v29, %v894_v34 }
  0x68   :  { %1671 = vmatpush3.bf16.msra.mxu1 %v1777_v43 }
  0x69   :  { %1672 = vmatprep.subr.bf16.mxu1 %v1861_v8 }
  0x6a   :  { %1643 = vmatmul.mubr.msk.bf16.gmra.mrb[12].mxu0 %vm217_vm1, %v731_v11 }
  0x6b   :  { %1603 = vmatmul.mubr.msk.bf16.gmra.mrb[12].mxu1 %vm217_vm1, %v2085_v10  ;;  %1650 = vmatprep.mubr.msk.bf16.mxu0 %vm217_vm1, %v889_v31  ;;  %v1778_v10 = vld [vmem:[%s2363_s4 + $0x18] sm:$0xff]  }
  0x6c   :  { %1673 = vmatpush3.bf16.msra.mxu1 %v1778_v10  ;;  %1682 = vmatprep.mubr.msk.bf16.mxu1 %vm1862_vm5, %v1861_v8 }
  0x6d   :  { %1674 = vmatprep.subr.bf16.mxu1 %v1861_v8 }
  0x70   :  { %1675 = vmatpush3.bf16.msra.mxu1 %v1779_v36 }
  0x71   :  { %1676 = vmatprep.subr.bf16.mxu1 %v1861_v8 }
  0x72   :  { %1651 = vmatmul.mubr.msk.bf16.vlgmr.msra.gmra.mrb[0].mxu0 %vm217_vm1, %v892_v13 }
  0x73   :  { %1654 = vmatprep.mubr.msk.bf16.mxu0 %vm217_vm1, %v895_v35 }
  0x74   :  { %1677 = vmatpush3.bf16.msra.mxu1 %v1780_v16 }
  0x75   :  { %1678 = vmatprep.subr.bf16.mxu1 %v1861_v8 }
  0x78   :  { %1679 = vmatpush3.bf16.msra.mxu1 %v1781_v57 }
  0x79   :  { %1680 = vmatprep.subr.bf16.mxu1 %v1861_v8 }
  0x7a   :  { %1655 = vmatmul.mubr.msk.bf16.gmra.mrb[4].mxu0 %vm217_vm1, %v898_v0 }
  0x7b   :  { %1658 = vmatprep.mubr.msk.bf16.mxu0 %vm217_vm1, %v901_v1 }
  0x7c   :  { %1681 = vmatpush3.bf16.msra.mxu1 %v1782_v41 }
  0x7d   :  { %1686 = vmatprep.subr.bf16.mxu1 %v1861_v8 }
  0x82   :  { %1659 = vmatmul.mubr.msk.bf16.gmra.mrb[8].mxu0 %vm217_vm1, %v904_v38 }
  0x83   :  { %1662 = vmatprep.mubr.msk.bf16.mxu0 %vm217_vm1, %v907_v14 }
  0x8a   :  { %1663 = vmatmul.mubr.msk.bf16.gmra.mrb[12].mxu0 %vm217_vm1, %v910_v58 }
 0x126   :  { %v1592_v61 = vpop.f32.mrb[0].mxu1 }
 0x127   :  { %v401_v17 = vpop.f32.mrb[1].mxu1 }
 0x128   :  { %v1593_v23 = vpop.f32.mrb[2].mxu1 }
 0x129   :  { %v404_v44 = vpop.f32.mrb[3].mxu1 }
 0x12e   :  { %v1596_v62 = vpop.f32.mrb[4].mxu1 }
 0x12f   :  { %v417_v49 = vpop.f32.mrb[5].mxu1 }
 0x130   :  { %v1597_v50 = vpop.f32.mrb[6].mxu1 }
 0x131   :  { %v420_v24 = vpop.f32.mrb[7].mxu1 }
 0x136   :  { %v1600_v53 = vpop.f32.mrb[8].mxu1 }
 0x137   :  { %v433_v55 = vpop.f32.mrb[9].mxu1 }
 0x138   :  { %v2272_v60 = vpop.f32.mrb[10].mxu1 }
 0x139   :  { %v2274_v39 = vpop.f32.mrb[11].mxu1 }
 0x13e   :  { %v2276_v13 = vpop.f32.mrb[12].mxu1 }
 0x13f   :  { %v2278_v40 = vpop.f32.mrb[13].mxu1 }
 0x140   :  { %v2280_v12 = vpop.f32.mrb[14].mxu1 }
 0x141   :  { %v2282_v63 = vpop.f32.mrb[15].mxu1 }
 0x145   :  { %v1652_v0 = vpop.f32.mrb[0].mxu0 }
 0x146   :  { %v1694_v18 = vadd.f32 %v1652_v0, %v1592_v61  ;;  %v986_v1 = vpop.f32.mrb[1].mxu0 }
 0x147   :  { %v1695_v2 = vadd.f32 %v986_v1, %v401_v17  ;;  %v1653_v3 = vpop.f32.mrb[2].mxu0 }
 0x148   :  { %v1074_v5 = vadd.f32 %v1694_v18, %v2287_v46  ;;  %v1696_v6 = vadd.f32 %v1653_v3, %v1593_v23  ;;  %v989_v37 = vpop.f32.mrb[3].mxu0 }
 0x149   :  { %v1072_v38 = vadd.f32 %v1695_v2, %v2287_v46  ;;  %v1697_v9 = vadd.f32 %v989_v37, %v404_v44 }
 0x14a   :  { %v1090_v20 = vmax.f32 %v1074_v5, 0.0  ;;  %v1075_v21 = vadd.f32 %v1696_v6, %v2287_v46 }
 0x14b   :  { %v1088_v14 = vmax.f32 %v1072_v38, 0.0  ;;  %v1073_v33 = vadd.f32 %v1697_v9, %v2287_v46 }
 0x14c   :  { %v1091_v48 = vmax.f32 %v1075_v21, 0.0  ;;  %v1108_v15 = vmul.f32 %v2292_v22, %v1090_v20 }
 0x14d   :  { %v1089_v58 = vmax.f32 %v1073_v33, 0.0  ;;  %v1656_v59 = vpop.f32.mrb[4].mxu0  ;;  %v1106_v56 = vmul.f32 %v2292_v22, %v1088_v14 }
 0x14e   :  { %v1109_v52 = vmul.f32 %v2294_v51, %v1091_v48  ;;  %v1698_v54 = vadd.f32 %v1656_v59, %v1596_v62  ;;  %v1002_v19 = vpop.f32.mrb[5].mxu0 }
 0x14f   :  { %v1107_v4 = vmul.f32 %v2294_v51, %v1089_v58  ;;  %v1699_v45 = vadd.f32 %v1002_v19, %v417_v49  ;;  %v1657_v25 = vpop.f32.mrb[6].mxu0 }
 0x150   :  { %v1129_v47 = vmax.f32 %v1108_v15, %v1109_v52  ;;  %v1078_v26 = vadd.f32 %v1698_v54, %v2287_v46  ;;  %v1700_v28 = vadd.f32 %v1657_v25, %v1597_v50  ;;  %v1005_v27 = vpop.f32.mrb[7].mxu0 }
 0x151   :  { %v1122_v30 = vmax.f32 %v1106_v56, %v1107_v4  ;;  %v1076_v32 = vadd.f32 %v1699_v45, %v2287_v46  ;;  %v1701_v11 = vadd.f32 %v1005_v27, %v420_v24 }
 0x152   :  { %v1130_v31 = vrot.slane %v1129_v47, 4  ;;  %v1094_v29 = vmax.f32 %v1078_v26, 0.0  ;;  %v1079_v34 = vadd.f32 %v1700_v28, %v2287_v46 }
 0x153   :  { %v1123_v35 = vrot.slane %v1122_v30, 4  ;;  %v1092_v7 = vmax.f32 %v1076_v32, 0.0  ;;  %v1077_v42 = vadd.f32 %v1701_v11, %v2287_v46 }
 0x154   :  { %v1131_v43 = vmax.f32 %v1129_v47, %v1130_v31  ;;  %v1095_v10 = vmax.f32 %v1079_v34, 0.0  ;;  %v1112_v61 = vmul.f32 %v2292_v22, %v1094_v29 }
 0x155   :  { %v1124_v36 = vmax.f32 %v1122_v30, %v1123_v35  ;;  %v1093_v16 = vmax.f32 %v1077_v42, 0.0  ;;  %v1660_v57 = vpop.f32.mrb[8].mxu0  ;;  %v1110_v49 = vmul.f32 %v2292_v22, %v1092_v7 }
 0x156   :  { %v1132_v41 = vrot.slane %v1131_v43, 2  ;;  %v1113_v17 = vmul.f32 %v2294_v51, %v1095_v10  ;;  %v1702_v23 = vadd.f32 %v1660_v57, %v1600_v53  ;;  %v1018_v44 = vpop.f32.mrb[9].mxu0 }
 0x157   :  { %v1125_v62 = vrot.slane %v1124_v36, 2  ;;  %v1111_v50 = vmul.f32 %v2294_v51, %v1093_v16  ;;  %v1703_v24 = vadd.f32 %v1018_v44, %v433_v55  ;;  %v1661_v0 = vpop.f32.mrb[10].mxu0 }
 0x158   :  { %v1133_v18 = vmax.f32 %v1131_v43, %v1132_v41  ;;  %v1143_v1 = vmax.f32 %v1112_v61, %v1113_v17  ;;  %v1082_v2 = vadd.f32 %v1702_v23, %v2287_v46  ;;  %v1704_v3 = vadd.f32 %v1661_v0, %v2272_v60  ;;  %v1021_v5 = vpop.f32.mrb[11].mxu0 }
 0x159   :  { %v1126_v6 = vmax.f32 %v1124_v36, %v1125_v62  ;;  %v1136_v37 = vmax.f32 %v1110_v49, %v1111_v50  ;;  %v1080_v38 = vadd.f32 %v1703_v24, %v2287_v46  ;;  %v1705_v53 = vadd.f32 %v1021_v5, %v2274_v39 }
 0x15a   :  { %v1134_v9 = vrot.slane %v1133_v18, 1  ;;  %v1144_v20 = vrot.slane %v1143_v1, 4  ;;  %v1098_v21 = vmax.f32 %v1082_v2, 0.0  ;;  %v1083_v14 = vadd.f32 %v1704_v3, %v2287_v46 }
 0x15b   :  { %v1127_v55 = vrot.slane %v1126_v6, 1  ;;  %v1137_v33 = vrot.slane %v1136_v37, 4  ;;  %v1096_v48 = vmax.f32 %v1080_v38, 0.0  ;;  %v1081_v58 = vadd.f32 %v1705_v53, %v2287_v46 }
 0x15c   :  { %v1135_v59 = vmax.f32 %v1133_v18, %v1134_v9  ;;  %v1145_v15 = vmax.f32 %v1143_v1, %v1144_v20  ;;  %v1116_v60 = vmul.f32 %v2292_v22, %v1098_v21  ;;  %v1099_v52 = vmax.f32 %v1083_v14, 0.0 }
 0x15d   :  { %v1128_v54 = vmax.f32 %v1126_v6, %v1127_v55  ;;  %v1138_v19 = vmax.f32 %v1136_v37, %v1137_v33  ;;  %v1114_v56 = vmul.f32 %v2292_v22, %v1096_v48  ;;  %v1097_v39 = vmax.f32 %v1081_v58, 0.0  ;;  %v1664_v4 = vpop.f32.mrb[12].mxu0 }
 0x15e   :  { %v1179_v45 = vmax.f32 %v1135_v59, 0.0  ;;  %v1146_v25 = vrot.slane %v1145_v15, 2  ;;  %v1117_v47 = vmul.f32 %v2294_v51, %v1099_v52  ;;  %v1706_v26 = vadd.f32 %v1664_v4, %v2276_v13  ;;  %v1034_v28 = vpop.f32.mrb[13].mxu0 }
 0x15f   :  { %v1178_v27 = vmax.f32 %v1128_v54, 0.0  ;;  %v1139_v30 = vrot.slane %v1138_v19, 2  ;;  %v1115_v32 = vmul.f32 %v2294_v51, %v1097_v39  ;;  %v1707_v11 = vadd.f32 %v1034_v28, %v2278_v40  ;;  %v1665_v31 = vpop.f32.mrb[14].mxu0 }
 0x160   :  { %v1188_v29 = vpack.c.bf16 %v1179_v45, %v1179_v45  ;;  %v1147_v34 = vmax.f32 %v1145_v15, %v1146_v25  ;;  %v1157_v35 = vmax.f32 %v1116_v60, %v1117_v47  ;;  %v1037_v7 = vpop.f32.mrb[15].mxu0  ;;  %v1086_v36 = vadd.f32 %v1706_v26, %v2287_v46 }
 0x161   :  { %v1187_v42 = vpack.c.bf16 %v1178_v27, %v1178_v27  ;;  %v1140_v43 = vmax.f32 %v1138_v19, %v1139_v30  ;;  %v1150_v10 = vmax.f32 %v1114_v56, %v1115_v32  ;;  %v1084_v23 = vadd.f32 %v1707_v11, %v2287_v46 }
 0x162   :  { %v1220_v16 = vunpack.c.l.b16 %v1188_v29  ;;  %v1148_v13 = vrot.slane %v1147_v34, 1  ;;  %v1158_v57 = vrot.slane %v1157_v35, 4  ;;  %v1708_v62 = vadd.f32 %v1665_v31, %v2280_v12 }
 0x163   :  { %v1219_v41 = vunpack.c.l.b16 %v1187_v42  ;;  %v1141_v61 = vrot.slane %v1140_v43, 1  ;;  %v1151_v17 = vrot.slane %v1150_v10, 4  ;;  %v1102_v0 = vmax.f32 %v1086_v36, 0.0 }
 0x164   :  { %v1149_v40 = vmax.f32 %v1147_v34, %v1148_v13  ;;  %v1159_v44 = vmax.f32 %v1157_v35, %v1158_v57  ;;  %v1087_v2 = vadd.f32 %v1708_v62, %v2287_v46  ;;  %v1709_v3 = vadd.f32 %v1037_v7, %v2282_v63  ;;  %v1784_v62 = vld [vmem:[%s2365_s6 + $0x8] sm:$0xff]  }
 0x165   :  { %v1228_v49 = vsel %vm1227_vm6, %v1220_v16, %v1219_v41  ;;  %v1142_v50 = vmax.f32 %v1140_v43, %v1141_v61  ;;  %v1152_v24 = vmax.f32 %v1150_v10, %v1151_v17  ;;  %v1100_v37 = vmax.f32 %v1084_v23, 0.0 }
 0x166   :  { %v1181_v18 = vmax.f32 %v1149_v40, 0.0  ;;  %v1160_v1 = vrot.slane %v1159_v44, 2  ;;  %v1103_v9 = vmax.f32 %v1087_v2, 0.0  ;;  %v1085_v20 = vadd.f32 %v1709_v3, %v2287_v46 }
 0x167   :  { %v1180_v5 = vmax.f32 %v1142_v50, 0.0  ;;  %v1153_v6 = vrot.slane %v1152_v24, 2  ;;  %v1120_v55 = vmul.f32 %v2292_v22, %v1102_v0  ;;  %v1118_v63 = vmul.f32 %v2292_v22, %v1100_v37 }
 0x168   :  { %v1190_v38 = vpack.c.bf16 %v1181_v18, %v1181_v18  ;;  %v1161_v53 = vmax.f32 %v1159_v44, %v1160_v1  ;;  %v1121_v33 = vmul.f32 %v2294_v51, %v1103_v9  ;;  %v1101_v48 = vmax.f32 %v1085_v20, 0.0  ;;  %v1783_v44 = vld [vmem:[%s2365_s6] sm:$0xff]   ;;  %s1414_s6 = sshll.u32 %s1863_s26, 4  ;;  %s1415_s6 = int_to_ptr.vmem [resolvable:$true] %s1414_s6 }
 0x169   :  { %v1189_v21 = vpack.c.bf16 %v1180_v5, %v1180_v5  ;;  %v1154_v12 = vmax.f32 %v1152_v24, %v1153_v6  ;;  %p1834_p3 = scmp.lt.s32.totalorder %s1415_s6, %s1415_s6 }
 0x16a   :  { %v1162_v14 = vrot.slane %v1161_v53, 1  ;;  %v1222_v15 = vunpack.c.l.b16 %v1190_v38  ;;  %v1171_v52 = vmax.f32 %v1120_v55, %v1121_v33  ;;  %v1119_v54 = vmul.f32 %v2294_v51, %v1101_v48 }
 0x16b   :  { %v1221_v58 = vunpack.c.l.b16 %v1189_v21  ;;  %v1155_v59 = vrot.slane %v1154_v12, 1 }
 0x16c   :  { %v1163_v60 = vmax.f32 %v1161_v53, %v1162_v14  ;;  %v1172_v39 = vrot.slane %v1171_v52, 4  ;;  %v1164_v4 = vmax.f32 %v1118_v63, %v1119_v54 }
 0x16d   :  { %v1230_v46 = vsel %vm1229_vm7, %v1221_v58, %v1228_v49  ;;  %v1156_v19 = vmax.f32 %v1154_v12, %v1155_v59  ;;  %v1499_v49 = vld [vmem:[%s2364_s5] ss:$0 sm:$0xff]  ;;  %s1829_s5 = scalar_lea.vmem %s1415_s6, 128 }
 0x16e   :  { %v1183_v56 = vmax.f32 %v1163_v60, 0.0  ;;  %v1232_v45 = vsel %vm1231_vm8, %v1222_v15, %v1230_v46  ;;  %v1173_v26 = vmax.f32 %v1171_v52, %v1172_v39  ;;  %v1165_v28 = vrot.slane %v1164_v4, 4  ;;  %p1830_p2 = scmp.ne.s32.totalorder %s1415_s6, %s1829_s5  ;;  %p1835_p4 = scmp.lt.s32.totalorder %s1829_s5, %s1829_s5 }
 0x16f   :  { %v1182_v25 = vmax.f32 %v1156_v19, 0.0 }
 0x170   :  { %v1192_v47 = vpack.c.bf16 %v1183_v56, %v1183_v56  ;;  %v1174_v30 = vrot.slane %v1173_v26, 2  ;;  %v1166_v32 = vmax.f32 %v1164_v4, %v1165_v28  ;;  %p1836_p5 = por %p1835_p4, %p1834_p3 }
 0x171   :  { %v1191_v27 = vpack.c.bf16 %v1182_v25, %v1182_v25 }
 0x172   :  { %v1224_v11 = vunpack.c.l.b16 %v1192_v47  ;;  %v1175_v31 = vmax.f32 %v1173_v26, %v1174_v30  ;;  %v1167_v29 = vrot.slane %v1166_v32, 2  ;;  %p1837_p6 = pnand %p1836_p5, %p1830_p2 }
 0x173   :  { %v1223_v22 = vunpack.c.l.b16 %v1191_v27 }
 0x174   :  { %v1176_v34 = vrot.slane %v1175_v31, 1  ;;  %v1168_v35 = vmax.f32 %v1166_v32, %v1167_v29 }
 0x175   :  { %v1234_v51 = vsel %vm1233_vm9, %v1223_v22, %v1232_v45 }
 0x176   :  { %v1236_v7 = vsel %vm1235_vm10, %v1224_v11, %v1234_v51  ;;  %v1177_v42 = vmax.f32 %v1175_v31, %v1176_v34  ;;  %v1169_v43 = vrot.slane %v1168_v35, 1 }
 0x178   :  { %v1185_v10 = vmax.f32 %v1177_v42, 0.0  ;;  %v1170_v36 = vmax.f32 %v1168_v35, %v1169_v43 }
 0x17a   :  { %v1184_v16 = vmax.f32 %v1170_v36, 0.0  ;;  %v1194_v13 = vpack.c.bf16 %v1185_v10, %v1185_v10 }
 0x17c   :  { %v1193_v57 = vpack.c.bf16 %v1184_v16, %v1184_v16  ;;  %v1226_v61 = vunpack.c.l.b16 %v1194_v13 }
 0x17e   :  { %v1225_v41 = vunpack.c.l.b16 %v1193_v57 }
 0x180   :  { %v1238_v17 = vsel %vm1237_vm11, %v1225_v41, %v1236_v7 }
 0x181   :  { %v1240_v23 = vsel %vm1239_vm12, %v1226_v61, %v1238_v17 }
 0x182   :  { %v1241_v40 = vpack.c.b16 %v1240_v23, %v1240_v23 }
 0x184   :  { %1683 = vmatmul.mubr.bf16.vlgmr.msra.gmra.mrb[16].mxu1 %v1241_v40 }
 0x185   :  { %1690 = vmatprep.mubr.msk.bf16.mxu1 %vm1862_vm5, %v1861_v8  ;;  %1687 = vmatpush3.bf16.msra.mxu1 %v1783_v44 }
 0x186   :  { %1688 = vmatprep.subr.bf16.mxu1 %v1861_v8  ;;  %v1503_v8 = vld [vmem:[%s2366_s7] ss:$0 sm:$0xff] }
 0x189   :  { %1689 = vmatpush3.bf16.msra.mxu1 %v1784_v62 }
 0x257   :  { %v1325_v50 = vpop.f32.mrb[16].mxu1 }
 0x258   :  { %v1337_v24 = vadd.f32 %v1499_v49, %v1325_v50  ;;  %v1684_v0 = vpop.f32.mrb[17].mxu1 }
 0x259   :  { %v1328_v18 = vpop.f32.mrb[18].mxu1 }
 0x25a   :  { %v1338_v1 = vmax.f32 %v1337_v24, 0.0  ;;  %v1685_v2 = vpop.f32.mrb[19].mxu1 }
 0x25c   :  { %v1340_v3 = vpack.c.bf16 %v1338_v1, %v1338_v1 }
 0x25e   :  { %1691 = vmatmul.mubr.msk.bf16.vlgmr.msra.gmra.mrb[20].mxu1 %vm217_vm1, %v1340_v3 }
 0x331   :  { %v1394_v5 = vpop.f32.mrb[20].mxu1 }
 0x332   :  { %v1406_v6 = vadd.f32 %v1503_v8, %v1394_v5  ;;  %v1692_v37 = vpop.f32.mrb[21].mxu1 }
 0x333   :  { %v1397_v38 = vpop.f32.mrb[22].mxu1 }
 0x334   :  { %1407 = vst [vmem:[#allocation7] sm:$0xff] %v1406_v6  ;;  %v1693_v53 = vpop.f32.mrb[23].mxu1 }
 0x335   :  { %1840 = shalt.err (!%p1837_p6)
}
 0x336   :  { %s1841_s7 = scalar_lea.hbm %s2367_s8, 128 }
 0x337   :  { %p1842_p7 = scmp.ne.s32.totalorder %s2367_s8, %s1841_s7  ;;  %p1845_p8 = scmp.lt.u32.totalorder %s1841_s7, %s2367_s8 }
 0x339   :  { %p1847_p9 = pnand %p1845_p8, %p1842_p7 }
 0x33b   :  { %1850 = shalt.err (!%p1847_p9)
}
 0x33c   :  { %1417 = dma.vmem_to_hbm [thread:$0]  %s1415_s6, 128, %s2367_s8, [#allocation4]  }
 0x33d   :  { %1855 = dma.done.wait [#allocation4], 128  }
 0x33e   :  { %1856 = vsyncadd [#allocation4], 4294967168 }
 0x33f   :  { %1421 = vsyncpa [#allocation3], 1 }
 0x340   :  { %1422 = vsyncpa [#allocation6], 1 }
 0x341   :  { %1423 = vsyncpa [#allocation4], 1 }

</bundles_post_ra>
